<compile_context>
chip_gen: v7x
topology: tpu7x:2x2x1
jax: 0.10.0
libtpu: 0.0.40
codegen_flags: <defaults>
</compile_context>

<pallas_src>
import jax
import jax.numpy as jnp
from jax.experimental import pallas as pl
from jax.experimental.pallas import tpu as pltpu

_LANE = 128
_BUDGET_BYTES = 4 * 1024 * 1024       # per-buffer tile budget (safe on all gens)
_VMEM_LIMIT = 32 * 1024 * 1024        # 2 in + 2 out double-buffers fit easily


def _copy_kernel(x_ref, o_ref):
    # Pure 2-D lane-dense copy; no reshape / relayout inside the kernel.
    o_ref[...] = x_ref[...]


def _sublane(itemsize: int) -> int:
    # Native sublane tile: f32 -> 8, bf16 -> 16, int8/fp8 -> 32.
    return max(8, 32 // itemsize)


def _tiled_copy(arr2d: jax.Array, block, grid, bytes_accessed: int) -> jax.Array:
    """Tiled memcpy of a 2-D array through VMEM (mem-bound; DMA is the limiter)."""
    if len(grid) == 1:
        index_map = lambda i: (i, 0)
        dims = ("parallel",)
    else:
        index_map = lambda i, j: (i, j)
        dims = ("parallel", "parallel")
    return pl.pallas_call(
        _copy_kernel,
        out_shape=jax.ShapeDtypeStruct(arr2d.shape, arr2d.dtype),
        grid_spec=pl.GridSpec(
            grid=grid,
            in_specs=[pl.BlockSpec(block, index_map)],
            out_specs=pl.BlockSpec(block, index_map),
        ),
        compiler_params=pltpu.CompilerParams(
            dimension_semantics=dims,
            vmem_limit_bytes=_VMEM_LIMIT,
        ),
        cost_estimate=pl.CostEstimate(
            flops=0, transcendentals=0, bytes_accessed=bytes_accessed),
    )(arr2d)


def flatten(x: jax.Array, *, materialize: bool = False) -> jax.Array:
    """Pallas equivalent of torch's x.view(x.size(0), -1).

    Default: metadata-only reshape (no kernel, no HBM traffic) — the faithful
    and fastest translation of .view.  With materialize=True, a Pallas memcpy
    kernel produces a freshly materialized output buffer.
    """
    B = x.shape[0]
    flat = 1
    for d in x.shape[1:]:
        flat *= d

    # Free (metadata-only) reshape; preserves row-major (c, h, w) ordering
    # exactly like torch .view(B, -1).
    out = x.reshape(B, flat)
    total = B * flat
    if not materialize or total == 0:
        return out

    itemsize = jnp.dtype(x.dtype).itemsize
    sub = _sublane(itemsize)
    bytes_accessed = 2 * total * itemsize

    if total % _LANE == 0:
        # Layout-preserving copy over a freely chosen lane-dense 2-D shape:
        # (R, C) with C a large multiple of 128 -> every block is a large,
        # contiguous, unmasked tile regardless of B / flat alignment.
        C = _LANE
        for cand in (4096, 2048, 1024, 512, 256, 128):
            if total % cand == 0:
                C = cand
                break
        R = total // C
        tr = max(sub, (_BUDGET_BYTES // (C * itemsize)) // sub * sub)
        if tr >= R:
            # One block would cover everything: split in two (when possible)
            # so both v7x TensorCores get work; tiny inputs stay single-block.
            tr = R if R < 2 * sub else max(sub, (R // 2) // sub * sub)
        grid = (pl.cdiv(R, tr),)
        y2 = _tiled_copy(out.reshape(R, C), (tr, C), grid, bytes_accessed)
        return y2.reshape(B, flat)

    # Ragged total (not a multiple of 128): keep the (B, flat) factorization.
    # Only the final (tail) block along each axis is masked; the byte budget
    # is enforced on this path as well.
    # TODO(synk): ragged lane tails pay masked vst; unavoidable without padding.
    if flat * itemsize * sub <= _BUDGET_BYTES:
        tn = flat                                   # full rows, one burst each
        tb = max(sub, (_BUDGET_BYTES // (flat * itemsize)) // sub * sub)
        if tb >= B:
            tb = B if B < 2 * sub else max(sub, (B // 2) // sub * sub)
    else:
        tn = max(_LANE, (_BUDGET_BYTES // (sub * itemsize)) // _LANE * _LANE)
        tb = sub
    grid = (pl.cdiv(B, tb), pl.cdiv(flat, tn))
    return _tiled_copy(out, (tb, tn), grid, bytes_accessed)


if __name__ == "__main__":
    key = jax.random.PRNGKey(0)

    # Small NCHW input consistent with a conv feature map: (B=2, C=4, H=16, W=16)
    x = jax.random.normal(key, (2, 4, 16, 16), dtype=jnp.float32)
    ref = x.reshape(x.shape[0], -1)

    # Default path: metadata-only reshape (the recommended production path).
    y0 = flatten(x)
    jax.block_until_ready(y0)
    assert y0.shape == (2, 4 * 16 * 16) and y0.dtype == x.dtype
    assert jnp.array_equal(y0, ref)

    # Materialized path: exercises the Pallas copy kernel (lane-dense re-factorized copy).
    y1 = flatten(x, materialize=True)
    jax.block_until_ready(y1)
    assert y1.shape == (2, 4 * 16 * 16) and y1.dtype == x.dtype
    assert jnp.array_equal(y1, ref)

    # Ragged-shape coverage (total not a multiple of 128) for the fallback path.
    x2 = jax.random.normal(jax.random.PRNGKey(1), (3, 5, 7), dtype=jnp.float32)
    y2 = flatten(x2, materialize=True)
    jax.block_until_ready(y2)
    assert jnp.array_equal(y2, x2.reshape(3, -1))

    print("KERNEL_OK")
</pallas_src>

<mosaic_0001>
module attributes {stable_mosaic.version = 11 : i64} {
  func.func @_copy_kernel(%arg0: i32, %arg1: memref<1x2048xf32, #tpu.memory_space<vmem>>, %arg2: memref<1x2048xf32, #tpu.memory_space<vmem>>) attributes {dimension_semantics = [#tpu.dimension_semantics<parallel>], iteration_bounds = array<i64: 1>, scalar_prefetch = 0 : i64, scratch_operands = 0 : i64, tpu.core_type = #tpu.core_type<tc>, window_params = [{transform_indices = @transform_0, window_bounds = array<i64: 1, 2048>}, {transform_indices = @transform_1, window_bounds = array<i64: 1, 2048>}]} {
    %c0 = arith.constant 0 : index
    %c0_0 = arith.constant 0 : index
    %0 = vector.load %arg1[%c0, %c0_0] : memref<1x2048xf32, #tpu.memory_space<vmem>>, vector<1x2048xf32>
    %c0_1 = arith.constant 0 : index
    %c0_2 = arith.constant 0 : index
    %1 = vector.load %arg2[%c0_1, %c0_2] : memref<1x2048xf32, #tpu.memory_space<vmem>>, vector<1x2048xf32>
    tpu.vector_store %arg2[%c0_1, %c0_2], %0 {strides = array<i32>} : memref<1x2048xf32, #tpu.memory_space<vmem>>, vector<1x2048xf32>,
    return
  }
  func.func @transform_0(%arg0: i32) -> (i32, i32) {
    %c0_i32 = arith.constant 0 : i32
    %c0_i32_0 = arith.constant 0 : i32
    return %arg0, %c0_i32 : i32, i32
  }
  func.func @transform_1(%arg0: i32) -> (i32, i32) {
    %c0_i32 = arith.constant 0 : i32
    %c0_i32_0 = arith.constant 0 : i32
    return %arg0, %c0_i32 : i32, i32
  }
}

</mosaic_0001>

<bundles_post_ra>
// kernel: tpu_custom_call.1
= control target key start
LH: loop header
LB: loop body
LE: loop exit
PB: predicated region body
PF: predicated region fallthrough
CT: control target
= control target key end

     0   :  { %6 = vsyncpa [#allocation3], 0  ;;  %s126_s0 = inlined_call_operand.hbm [shape: f32[1,2048], index: 0, kind: input, shape index: {}]   ;;  %s127_s1 = inlined_call_operand.hbm [shape: f32[1,2048], index: 1, kind: output, shape index: {}]  }
   0x1   :  { %7 = vsyncpa [#allocation4], 0  ;;  %s90_s6 = smov [#allocation2]   ;;  %s42_s10 = scalar_lea.hbm %s126_s0, 256 }
   0x2   :  { %s14_s7 = sshll.u32 %s90_s6, 4  ;;  %p43_p0 = scmp.ne.s32.totalorder %s126_s0, %s42_s10  ;;  %s15_s7 = int_to_ptr.vmem [resolvable:$true] %s14_s7 }
   0x3   :  { %p46_p1 = scmp.lt.u32.totalorder %s42_s10, %s126_s0 }
   0x5   :  { %p48_p2 = pnand %p46_p1, %p43_p0 }
   0x7   :  { %51 = shalt.err (!%p48_p2)
}
   0x8   :  { %s52_s15 = scalar_lea.vmem %s15_s7, 256  ;;  %p57_p4 = scmp.lt.s32.totalorder %s15_s7, %s15_s7 }
   0x9   :  { %p53_p3 = scmp.ne.s32.totalorder %s15_s7, %s52_s15  ;;  %p58_p5 = scmp.lt.s32.totalorder %s52_s15, %s52_s15 }
   0xb   :  { %p59_p6 = por %p58_p5, %p57_p4 }
   0xd   :  { %p60_p7 = pnand %p59_p6, %p53_p3 }
   0xf   :  { %63 = shalt.err (!%p60_p7)
}
  0x10   :  { %17 = dma.hbm_to_vmem [thread:$0]  %s126_s0, 256, %s15_s7, [#allocation3]  }
  0x11   :  { %86 = dma.done.wait [#allocation3], 256  }
  0x12   :  { %87 = vsyncadd [#allocation3], 4294967040  ;;  %s91_s18 = smov [#allocation5]   ;;  %v21_v0 = vld [vmem:[#allocation2] sm:$0xff]  ;;  %v22_v1 = vld [vmem:[#allocation2 + $0x8] sm:$0xff] }
  0x13   :  { %s31_s19 = sshll.u32 %s91_s18, 4  ;;  %23 = vst [vmem:[#allocation5] sm:$0xff] %v21_v0  ;;  %24 = vst [vmem:[#allocation5 + $0x8] sm:$0xff] %v22_v1  ;;  %s32_s19 = int_to_ptr.vmem [resolvable:$true] %s31_s19 }
  0x14   :  { %s64_s20 = scalar_lea.vmem %s32_s19, 256  ;;  %p69_p9 = scmp.lt.s32.totalorder %s32_s19, %s32_s19 }
  0x15   :  { %p65_p8 = scmp.ne.s32.totalorder %s32_s19, %s64_s20  ;;  %p70_p10 = scmp.lt.s32.totalorder %s64_s20, %s64_s20 }
  0x17   :  { %p71_p11 = por %p70_p10, %p69_p9 }
  0x19   :  { %p72_p12 = pnand %p71_p11, %p65_p8 }
  0x1b   :  { %75 = shalt.err (!%p72_p12)
}
  0x1c   :  { %s76_s0 = scalar_lea.hbm %s127_s1, 256 }
  0x1d   :  { %p77_p13 = scmp.ne.s32.totalorder %s127_s1, %s76_s0  ;;  %p80_p0 = scmp.lt.u32.totalorder %s76_s0, %s127_s1 }
  0x1f   :  { %p82_p1 = pnand %p80_p0, %p77_p13 }
  0x21   :  { %85 = shalt.err (!%p82_p1)
}
  0x22   :  { %34 = dma.vmem_to_hbm [thread:$0]  %s32_s19, 256, %s127_s1, [#allocation4]  }
  0x23   :  { %88 = dma.done.wait [#allocation4], 256  }
  0x24   :  { %89 = vsyncadd [#allocation4], 4294967040 }
  0x25   :  { %38 = vsyncpa [#allocation3], 1 }
  0x26   :  { %39 = vsyncpa [#allocation4], 1 }

</bundles_post_ra>
